<compile_context>
chip_gen: v6e
topology: v6e:2x2x1
jax: 0.10.0
libtpu: 0.0.40
codegen_flags: <defaults>
</compile_context>

<pallas_src>
import jax
import jax.numpy as jnp
from jax import lax
from jax.experimental import pallas as pl
from jax.experimental.pallas import tpu as pltpu


_UNROLL_T = 64                 # segment counts up to this are fully unrolled
_FAST_PATH_BYTES = 256 << 10   # below this, a fused XLA reduce beats a launch


# ----------------------------------------------------------------- helpers --

def _round_down(x, m):
    return (x // m) * m


def _sublane_pack(itemsize):
    # native packed-sublane multiple: 8 for 32-bit, 16 for 16-bit, 32 for 8-bit
    return max(8, 32 // max(int(itemsize), 1))


def _lane_chunk(tb, tf):
    # chunk the lane axis so the live (tb, chunk) carry stays ~<= 32 f32 vregs
    fc = _round_down(max((32 * 1024) // max(tb, 1), 128), 128)
    fc = max(fc, min(tf, 512))           # keep stores reasonably lane-dense
    return min(fc, tf)


def _vmem_ceiling():
    try:
        cap = int(pltpu.get_tpu_info().vmem_capacity_bytes)
    except Exception:
        cap = 64 << 20                   # conservative (v7x-sized) fallback
    # ~75% of physical VMEM: ~48 MiB on v7x, capped at 96 MiB on v5e/v6e.
    return min(int(cap * 3 // 4), 96 << 20)


# ----------------------------------------------------------------- kernels --

def _avg_kernel(x_ref, o_ref):
    # x_ref: (TB, T, TF) ; o_ref: (TB, TF)
    tb, t, tf = x_ref.shape
    fc = _lane_chunk(tb, tf)
    inv_t = 1.0 / t
    for c in range(0, tf, fc):
        w = min(fc, tf - c)
        sl = pl.ds(c, w)
        if t <= _UNROLL_T:
            acc = x_ref[:, 0, sl].astype(jnp.float32)
            for s in range(1, t):
                acc = acc + x_ref[:, s, sl].astype(jnp.float32)
        else:
            # unusually large segment counts: running carry via fori_loop
            def body(s, acc):
                row = x_ref[:, pl.ds(s, 1), sl][:, 0, :]
                return acc + row.astype(jnp.float32)
            acc = lax.fori_loop(1, t, body,
                                x_ref[:, 0, sl].astype(jnp.float32))
        o_ref[:, sl] = (acc * inv_t).astype(o_ref.dtype)


def _max_kernel(x_ref, v_ref, i_ref):
    # x_ref: (TB, T, TF) ; v_ref: (TB, TF) ; i_ref: (TB, TF) int32
    tb, t, tf = x_ref.shape
    fc = _lane_chunk(tb, tf)
    for c in range(0, tf, fc):
        w = min(fc, tf - c)
        sl = pl.ds(c, w)
        vmax = x_ref[:, 0, sl]
        vidx = jnp.zeros(vmax.shape, jnp.int32)
        if t <= _UNROLL_T:
            for s in range(1, t):
                row = x_ref[:, s, sl]
                take = row > vmax                 # strict -> first-occurrence ties
                vmax = jnp.where(take, row, vmax)
                vidx = jnp.where(take, jnp.int32(s), vidx)
        else:
            def body(s, carry):
                vm, vi = carry
                row = x_ref[:, pl.ds(s, 1), sl][:, 0, :]
                take = row > vm
                return jnp.where(take, row, vm), jnp.where(take, s, vi)
            vmax, vidx = lax.fori_loop(1, t, body, (vmax, vidx))
        v_ref[:, sl] = vmax.astype(v_ref.dtype)
        i_ref[:, sl] = vidx


# ------------------------------------------------------------------ tiling --

def _choose_tiles(B, T, F, itemsize, target_bytes):
    pack = _sublane_pack(itemsize)

    # Feature (lane) tile: prefer tf == F whenever a pack-row group of the
    # full feature width fits the per-buffer budget (fully contiguous reads).
    if F <= 512 or pack * T * F * itemsize <= target_bytes:
        tf = F
    else:
        want = max(target_bytes // max(pack * T * itemsize, 1),
                   2048 // itemsize)              # >= 2 KiB per DMA row
        tf = max(128, _round_down(want, 128))
        if tf >= F:
            tf = F

    # Batch (sublane) tile: fill the remaining budget; the 2-D output block
    # needs tb % pack == 0 unless tb == B.
    row_bytes = max(T * tf * itemsize, 1)
    tb = target_bytes // row_bytes
    if tb >= B:
        tb = B
    else:
        tb = max(pack, _round_down(tb, pack))
        if tb >= B:
            tb = B
    return tb, tf


def _ensure_multi_step(B, F, tb, tf, itemsize):
    # v7x has 2 TensorCores per chip: a 1-step grid leaves one idle.
    if pl.cdiv(B, tb) * pl.cdiv(F, tf) >= 2:
        return tb, tf
    pack = _sublane_pack(itemsize)
    if F >= 256:
        tf = max(128, _round_down((F + 1) // 2, 128))
    elif B >= 2 * pack:
        tb = max(pack, _round_down((B + 1) // 2, pack))
    return tb, tf


# ----------------------------------------------------------------- wrapper --

def consensus(x, consensus_type, dim=1, *, tile_b=None, tile_f=None,
              force_pallas=False):
    """Pallas implementation of ConsensusModule.forward.

      avg      -> input.mean(dim)
      max      -> (values, int32 indices) of input.max(dim)
      identity -> input (returned as-is, no kernel)
    """
    consensus_type = consensus_type.lower()
    if consensus_type not in ("avg", "max", "identity"):
        raise ValueError(f"Unknown consensus type '{consensus_type}'")
    if consensus_type == "identity":
        return x                                   # true no-op

    dim = dim % x.ndim
    if dim != 1:
        x = jnp.moveaxis(x, dim, 1)                # reduce over axis 1 below

    B, T = x.shape[0], x.shape[1]
    feat_shape = x.shape[2:]
    F = 1
    for s in feat_shape:
        F *= s
    itemsize = jnp.dtype(x.dtype).itemsize

    # Tiny inputs: a fused XLA reduce beats a Pallas launch on every chip.
    if not force_pallas and B * T * F * itemsize <= _FAST_PATH_BYTES:
        if consensus_type == "avg":
            return jnp.mean(x.astype(jnp.float32), axis=1).astype(x.dtype)
        return (jnp.max(x, axis=1),
                jnp.argmax(x, axis=1).astype(jnp.int32))

    x3 = x.reshape(B, T, F)

    vmem_ceiling = _vmem_ceiling()
    target = min(8 << 20, max(1 << 20, vmem_ceiling // 5))
    tb, tf = _choose_tiles(B, T, F, itemsize, target)
    tb, tf = _ensure_multi_step(B, F, tb, tf, itemsize)
    if tile_b is not None:
        tb = tile_b
    if tile_f is not None:
        tf = tile_f

    grid = (pl.cdiv(B, tb), pl.cdiv(F, tf))
    in_spec = pl.BlockSpec((tb, T, tf), lambda b, f: (b, 0, f))
    out_spec = pl.BlockSpec((tb, tf), lambda b, f: (b, f))

    # Generation-aware scoped-VMEM budget: double-buffered input + outputs.
    n_out = 2 if consensus_type == "max" else 1
    in_tile = tb * T * tf * itemsize
    out_tile = tb * tf * max(itemsize, 4)
    est = 2 * in_tile + 2 * n_out * out_tile + (1 << 20)
    vmem_limit = int(min(vmem_ceiling, max(16 << 20, 3 * est // 2)))

    cp = pltpu.CompilerParams(
        dimension_semantics=("parallel", "parallel"),
        vmem_limit_bytes=vmem_limit,
    )

    if consensus_type == "avg":
        out = pl.pallas_call(
            _avg_kernel,
            grid=grid,
            in_specs=[in_spec],
            out_specs=out_spec,
            out_shape=jax.ShapeDtypeStruct((B, F), x.dtype),
            compiler_params=cp,
        )(x3)
        return out.reshape((B,) + feat_shape)

    # consensus_type == "max"
    vals, idxs = pl.pallas_call(
        _max_kernel,
        grid=grid,
        in_specs=[in_spec],
        out_specs=(out_spec, out_spec),
        out_shape=(
            jax.ShapeDtypeStruct((B, F), x.dtype),
            jax.ShapeDtypeStruct((B, F), jnp.int32),
        ),
        compiler_params=cp,
    )(x3)
    return vals.reshape((B,) + feat_shape), idxs.reshape((B,) + feat_shape)


# ------------------------------------------------------------------- main ---

if __name__ == "__main__":
    k1, k2, k3, k4, k5 = jax.random.split(jax.random.PRNGKey(0), 5)

    # --- small "TSN head" shape: batch=2, segments=8, hidden=32 --------------
    B, T, F = 2, 8, 32
    x = jax.random.normal(k1, (B, T, F), dtype=jnp.float32)

    avg_out = jax.block_until_ready(consensus(x, "avg", force_pallas=True))
    assert avg_out.shape == (B, F)
    assert jnp.allclose(avg_out, jnp.mean(x, axis=1), atol=1e-5, rtol=1e-5)

    max_vals, max_idxs = consensus(x, "max", force_pallas=True)
    jax.block_until_ready((max_vals, max_idxs))
    assert jnp.allclose(max_vals, jnp.max(x, axis=1), atol=1e-6)
    assert jnp.array_equal(max_idxs, jnp.argmax(x, axis=1).astype(jnp.int32))

    id_out = consensus(x, "identity")
    assert id_out is x  # identity is a true no-op

    # fast path (no forced Pallas) must agree too
    avg_fast = jax.block_until_ready(consensus(x, "avg"))
    assert jnp.allclose(avg_fast, jnp.mean(x, axis=1), atol=1e-5, rtol=1e-5)
    mvf, mif = consensus(x, "max")
    jax.block_until_ready((mvf, mif))
    assert jnp.allclose(mvf, jnp.max(x, axis=1), atol=1e-6)
    assert jnp.array_equal(mif, jnp.argmax(x, axis=1).astype(jnp.int32))

    # --- multi-dim features: (B, T, C, H, W) ----------------------------------
    x4 = jax.random.normal(k2, (2, 8, 4, 4, 4), dtype=jnp.float32)
    avg4 = jax.block_until_ready(consensus(x4, "avg", force_pallas=True))
    assert avg4.shape == (2, 4, 4, 4)
    assert jnp.allclose(avg4, jnp.mean(x4, axis=1), atol=1e-5, rtol=1e-5)
    mv4, mi4 = consensus(x4, "max", force_pallas=True)
    jax.block_until_ready((mv4, mi4))
    assert jnp.allclose(mv4, jnp.max(x4, axis=1), atol=1e-6)
    assert jnp.array_equal(mi4, jnp.argmax(x4, axis=1).astype(jnp.int32))

    # --- multi-block grid + partial blocks (forced small tiles) ---------------
    xb = jax.random.normal(k3, (20, 8, 320), dtype=jnp.float32)
    avg_b = jax.block_until_ready(
        consensus(xb, "avg", tile_b=8, tile_f=128, force_pallas=True))
    assert jnp.allclose(avg_b, jnp.mean(xb, axis=1), atol=1e-5, rtol=1e-5)
    mv_b, mi_b = consensus(xb, "max", tile_b=8, tile_f=128, force_pallas=True)
    jax.block_until_ready((mv_b, mi_b))
    assert jnp.allclose(mv_b, jnp.max(xb, axis=1), atol=1e-6)
    assert jnp.array_equal(mi_b, jnp.argmax(xb, axis=1).astype(jnp.int32))

    # --- auto-tiled Pallas path (>= fast-path threshold, >=2 grid steps) ------
    xm = jax.random.normal(k4, (16, 8, 4096), dtype=jnp.float32)
    avg_m = jax.block_until_ready(consensus(xm, "avg"))
    assert jnp.allclose(avg_m, jnp.mean(xm, axis=1), atol=1e-5, rtol=1e-5)
    mv_m, mi_m = consensus(xm, "max")
    jax.block_until_ready((mv_m, mi_m))
    assert jnp.allclose(mv_m, jnp.max(xm, axis=1), atol=1e-6)
    assert jnp.array_equal(mi_m, jnp.argmax(xm, axis=1).astype(jnp.int32))

    # --- bf16 (packed-sublane dtype) ------------------------------------------
    xh = jax.random.normal(k5, (32, 8, 1024), dtype=jnp.float32).astype(jnp.bfloat16)
    avg_h = jax.block_until_ready(consensus(xh, "avg"))
    ref_h = jnp.mean(xh.astype(jnp.float32), axis=1)
    assert jnp.allclose(avg_h.astype(jnp.float32), ref_h, atol=2e-2, rtol=2e-2)
    mv_h, mi_h = consensus(xh, "max")
    jax.block_until_ready((mv_h, mi_h))
    assert jnp.array_equal(mv_h, jnp.max(xh, axis=1))
    assert jnp.array_equal(mi_h, jnp.argmax(xh, axis=1).astype(jnp.int32))

    print("KERNEL_OK")
</pallas_src>

<mosaic_0001>
module attributes {stable_mosaic.version = 11 : i64} {
  func.func @_avg_kernel(%arg0: i32, %arg1: i32, %arg2: memref<2x8x32xf32, #tpu.memory_space<vmem>>, %arg3: memref<2x32xf32, #tpu.memory_space<vmem>>) attributes {dimension_semantics = [#tpu.dimension_semantics<parallel>, #tpu.dimension_semantics<parallel>], iteration_bounds = array<i64: 1, 1>, scalar_prefetch = 0 : i64, scratch_operands = 0 : i64, tpu.core_type = #tpu.core_type<tc>, window_params = [{transform_indices = @transform_0, window_bounds = array<i64: 2, 8, 32>}, {transform_indices = @transform_1, window_bounds = array<i64: 2, 32>}]} {
    %c0 = arith.constant 0 : index
    %c0_0 = arith.constant 0 : index
    %c0_1 = arith.constant 0 : index
    %0 = vector.load %arg2[%c0, %c0_0, %c0_1] : memref<2x8x32xf32, #tpu.memory_space<vmem>>, vector<2x1x32xf32>
    %1 = vector.shape_cast %0 : vector<2x1x32xf32> to vector<2x32xf32>
    %c0_2 = arith.constant 0 : index
    %c1 = arith.constant 1 : index
    %c0_3 = arith.constant 0 : index
    %2 = vector.load %arg2[%c0_2, %c1, %c0_3] : memref<2x8x32xf32, #tpu.memory_space<vmem>>, vector<2x1x32xf32>
    %3 = vector.shape_cast %2 : vector<2x1x32xf32> to vector<2x32xf32>
    %4 = arith.addf %1, %3 : vector<2x32xf32>
    %c0_4 = arith.constant 0 : index
    %c2 = arith.constant 2 : index
    %c0_5 = arith.constant 0 : index
    %5 = vector.load %arg2[%c0_4, %c2, %c0_5] : memref<2x8x32xf32, #tpu.memory_space<vmem>>, vector<2x1x32xf32>
    %6 = vector.shape_cast %5 : vector<2x1x32xf32> to vector<2x32xf32>
    %7 = arith.addf %4, %6 : vector<2x32xf32>
    %c0_6 = arith.constant 0 : index
    %c3 = arith.constant 3 : index
    %c0_7 = arith.constant 0 : index
    %8 = vector.load %arg2[%c0_6, %c3, %c0_7] : memref<2x8x32xf32, #tpu.memory_space<vmem>>, vector<2x1x32xf32>
    %9 = vector.shape_cast %8 : vector<2x1x32xf32> to vector<2x32xf32>
    %10 = arith.addf %7, %9 : vector<2x32xf32>
    %c0_8 = arith.constant 0 : index
    %c4 = arith.constant 4 : index
    %c0_9 = arith.constant 0 : index
    %11 = vector.load %arg2[%c0_8, %c4, %c0_9] : memref<2x8x32xf32, #tpu.memory_space<vmem>>, vector<2x1x32xf32>
    %12 = vector.shape_cast %11 : vector<2x1x32xf32> to vector<2x32xf32>
    %13 = arith.addf %10, %12 : vector<2x32xf32>
    %c0_10 = arith.constant 0 : index
    %c5 = arith.constant 5 : index
    %c0_11 = arith.constant 0 : index
    %14 = vector.load %arg2[%c0_10, %c5, %c0_11] : memref<2x8x32xf32, #tpu.memory_space<vmem>>, vector<2x1x32xf32>
    %15 = vector.shape_cast %14 : vector<2x1x32xf32> to vector<2x32xf32>
    %16 = arith.addf %13, %15 : vector<2x32xf32>
    %c0_12 = arith.constant 0 : index
    %c6 = arith.constant 6 : index
    %c0_13 = arith.constant 0 : index
    %17 = vector.load %arg2[%c0_12, %c6, %c0_13] : memref<2x8x32xf32, #tpu.memory_space<vmem>>, vector<2x1x32xf32>
    %18 = vector.shape_cast %17 : vector<2x1x32xf32> to vector<2x32xf32>
    %19 = arith.addf %16, %18 : vector<2x32xf32>
    %c0_14 = arith.constant 0 : index
    %c7 = arith.constant 7 : index
    %c0_15 = arith.constant 0 : index
    %20 = vector.load %arg2[%c0_14, %c7, %c0_15] : memref<2x8x32xf32, #tpu.memory_space<vmem>>, vector<2x1x32xf32>
    %21 = vector.shape_cast %20 : vector<2x1x32xf32> to vector<2x32xf32>
    %22 = arith.addf %19, %21 : vector<2x32xf32>
    %cst = arith.constant 1.250000e-01 : f32
    %23 = vector.broadcast %cst : f32 to vector<2x32xf32>
    %24 = arith.mulf %22, %23 : vector<2x32xf32>
    %c0_16 = arith.constant 0 : index
    %c0_17 = arith.constant 0 : index
    %25 = vector.load %arg3[%c0_16, %c0_17] : memref<2x32xf32, #tpu.memory_space<vmem>>, vector<2x32xf32>
    tpu.vector_store %arg3[%c0_16, %c0_17], %24 {strides = array<i32>} : memref<2x32xf32, #tpu.memory_space<vmem>>, vector<2x32xf32>,
    return
  }
  func.func @transform_0(%arg0: i32, %arg1: i32) -> (i32, i32, i32) {
    %c0_i32 = arith.constant 0 : i32
    %c0_i32_0 = arith.constant 0 : i32
    return %arg0, %c0_i32, %arg1 : i32, i32, i32
  }
  func.func @transform_1(%arg0: i32, %arg1: i32) -> (i32, i32) {
    %c0_i32 = arith.constant 0 : i32
    return %arg0, %arg1 : i32, i32
  }
}

</mosaic_0001>

<bundles_post_ra>
// kernel: tpu_custom_call.1
= control target key start
LH: loop header
LB: loop body
LE: loop exit
PB: predicated region body
PF: predicated region fallthrough
CT: control target
= control target key end

     0   :  { %6 = vsyncpa [#allocation3], 0  ;;  %s146_s0 = inlined_call_operand.hbm [shape: f32[2,8,32], index: 0, kind: input, shape index: {}]   ;;  %s147_s1 = inlined_call_operand.hbm [shape: f32[2,32], index: 1, kind: output, shape index: {}]  }
   0x1   :  { %7 = vsyncpa [#allocation4], 0  ;;  %s126_s6 = smov [#allocation2]  }
   0x2   :  { %s13_s7 = sshll.u32 %s126_s6, 4  ;;  %s14_s7 = int_to_ptr.vmem [resolvable:$true] %s13_s7 }
   0x3   :  { %s90_s8 = scalar_lea.vmem %s14_s7, 256  ;;  %p95_p1 = scmp.lt.s32.totalorder %s14_s7, %s14_s7 }
   0x4   :  { %p91_p0 = scmp.ne.s32.totalorder %s14_s7, %s90_s8  ;;  %p96_p2 = scmp.lt.s32.totalorder %s90_s8, %s90_s8 }
   0x6   :  { %p97_p3 = por %p96_p2, %p95_p1 }
   0x8   :  { %p98_p4 = pnand %p97_p3, %p91_p0 }
   0xa   :  { %101 = shalt.err (!%p98_p4)
}
   0xb   :  { %s127_s9 = smov 128   ;;  %s128_s10 = smov 8  }
   0xc   :  { %19 = dma.hbm_to_vmem [thread:$0]  %s146_s0, 256, %s14_s7, [#allocation3], %s127_s9, %s127_s9, %s128_s10  }
   0xd   :  { %122 = dma.done.wait [#allocation3], 256  }
   0xe   :  { %123 = vsyncadd [#allocation3], 4294967040  ;;  %v23_v0 = vld [vmem:[#allocation2] sm:$0x1]  ;;  %v24_v1 = vld [vmem:[#allocation2 + $0x8] sm:$0x1] }
   0xf   :  { %v25_v2 = vld [vmem:[#allocation2 + $0x1] sm:$0x1]  ;;  %v26_v3 = vld [vmem:[#allocation2 + $0x9] sm:$0x1]  ;;  %v29_v5 = vld [vmem:[#allocation2 + $0x2] sm:$0x1] }
  0x10   :  { %v27_v4 = vadd.f32 %v25_v2, %v23_v0  ;;  %v30_v6 = vld [vmem:[#allocation2 + $0xa] sm:$0x1]  ;;  %v28_v7 = vadd.f32 %v26_v3, %v24_v1  ;;  %v33_v8 = vld [vmem:[#allocation2 + $0x3] sm:$0x1]  ;;  %v34_v10 = vld [vmem:[#allocation2 + $0xb] sm:$0x1] }
  0x11   :  { %v37_v12 = vld [vmem:[#allocation2 + $0x4] sm:$0x1]  ;;  %v38_v14 = vld [vmem:[#allocation2 + $0xc] sm:$0x1]  ;;  %v41_v16 = vld [vmem:[#allocation2 + $0x5] sm:$0x1] }
  0x12   :  { %v31_v9 = vadd.f32 %v29_v5, %v27_v4  ;;  %v32_v11 = vadd.f32 %v30_v6, %v28_v7  ;;  %v42_v18 = vld [vmem:[#allocation2 + $0xd] sm:$0x1]  ;;  %v45_v20 = vld [vmem:[#allocation2 + $0x6] sm:$0x1]  ;;  %v46_v22 = vld [vmem:[#allocation2 + $0xe] sm:$0x1] }
  0x13   :  { %v49_v24 = vld [vmem:[#allocation2 + $0x7] sm:$0x1]  ;;  %v50_v26 = vld [vmem:[#allocation2 + $0xf] sm:$0x1]  ;;  %s129_s0 = smov [#allocation5]   ;;  %vm58_vm0 = vcmask 1041409  }
  0x14   :  { %v35_v13 = vadd.f32 %v33_v8, %v31_v9  ;;  %v36_v15 = vadd.f32 %v34_v10, %v32_v11  ;;  %s69_s13 = sshll.u32 %s129_s0, 4  ;;  %vm61_vm1 = vcmask 254976   ;;  %s70_s13 = int_to_ptr.vmem [resolvable:$true] %s69_s13 }
  0x15   :  { %s102_s14 = scalar_lea.vmem %s70_s13, 32  ;;  %p107_p6 = scmp.lt.s32.totalorder %s70_s13, %s70_s13 }
  0x16   :  { %v39_v17 = vadd.f32 %v37_v12, %v35_v13  ;;  %v40_v19 = vadd.f32 %v38_v14, %v36_v15  ;;  %p103_p5 = scmp.ne.s32.totalorder %s70_s13, %s102_s14  ;;  %p108_p7 = scmp.lt.s32.totalorder %s102_s14, %s102_s14 }
  0x18   :  { %v43_v21 = vadd.f32 %v41_v16, %v39_v17  ;;  %v44_v23 = vadd.f32 %v42_v18, %v40_v19  ;;  %p109_p8 = por %p108_p7, %p107_p6 }
  0x1a   :  { %v47_v25 = vadd.f32 %v45_v20, %v43_v21  ;;  %v48_v27 = vadd.f32 %v46_v22, %v44_v23  ;;  %p110_p9 = pnand %p109_p8, %p103_p5 }
  0x1c   :  { %v51_v28 = vadd.f32 %v49_v24, %v47_v25  ;;  %v52_v29 = vadd.f32 %v50_v26, %v48_v27 }
  0x1e   :  { %v53_v30 = vmul.f32 0.125, %v51_v28  ;;  %v54_v31 = vmul.f32 0.125, %v52_v29 }
  0x20   :  { %v57_v32 = vrot.slane %v54_v31, 7 }
  0x22   :  { %v59_v33 = vsel %vm58_vm0, %v57_v32, %v53_v30 }
  0x23   :  { %62 = vst.msk [vmem:[#allocation5] sm:$0x3] %vm61_vm1, %v59_v33 }
  0x24   :  { %113 = shalt.err (!%p110_p9)
}
  0x25   :  { %72 = dma.vmem_to_hbm [thread:$0]  %s70_s13, 32, %s147_s1, [#allocation4]  }
  0x26   :  { %124 = dma.done.wait [#allocation4], 32  }
  0x27   :  { %125 = vsyncadd [#allocation4], 4294967264 }
  0x28   :  { %76 = vsyncpa [#allocation3], 1 }
  0x29   :  { %77 = vsyncpa [#allocation4], 1 }

</bundles_post_ra>
